<compile_context>
chip_gen: v5e
topology: v5e:2x2
jax: 0.10.0
libtpu: 0.0.40
codegen_flags: <defaults>
</compile_context>

<pallas_src>
import functools

import jax
import jax.numpy as jnp
from jax import lax
from jax.experimental import pallas as pl
from jax.experimental.pallas import tpu as pltpu


_TM_CAP = 512    # batch tile cap (multiple of 8)
_TN_CAP = 256    # out-features tile cap (multiple of 128, fills MXU width)
_TK_CAP = 2048   # in-features (reduction) tile cap (multiple of 128)


def _round_up(v, m):
    return ((v + m - 1) // m) * m


def _linear_kernel(x_ref, w_ref, b_ref, o_ref, *scratch,
                   in_features, tk, mask_k):
    # x_ref: (tm, tk)  activation tile
    # w_ref: (tk, tn)  weight tile, pre-transposed (In, Out) layout
    # b_ref: (1,  tn)  bias tile (block index only depends on j -> no k re-fetch)
    # o_ref: (tm, tn)  output tile, resident across the K grid axis
    # scratch: optional f32 accumulator (only allocated for non-f32 outputs)
    acc_ref = scratch[0] if scratch else o_ref
    k = pl.program_id(2)

    @pl.when(k == 0)
    def _():
        # Fold the bias into the accumulator init (cheap VPU work under MXU slack).
        acc_ref[...] = jnp.broadcast_to(
            b_ref[...].astype(acc_ref.dtype), acc_ref.shape)

    x = x_ref[...]
    w = w_ref[...]
    if mask_k:
        # The last K block may read out-of-bounds (unspecified, possibly NaN)
        # data; mask BOTH operands to exact zeros so the tail contributes nothing.
        col = k * tk + lax.broadcasted_iota(jnp.int32, x.shape, 1)
        x = jnp.where(col < in_features, x, jnp.zeros_like(x))
        row = k * tk + lax.broadcasted_iota(jnp.int32, w.shape, 0)
        w = jnp.where(row < in_features, w, jnp.zeros_like(w))

    acc_ref[...] += jnp.dot(x, w, preferred_element_type=jnp.float32)

    if scratch:
        @pl.when(k == pl.num_programs(2) - 1)
        def _():
            o_ref[...] = acc_ref[...].astype(o_ref.dtype)


def prepare_weight(weight):
    """One-time parameter setup: store nn.Linear's (Out, In) weight as (In, Out).

    This is done once at init (NOT per forward call), so the kernel can run the
    canonical (M,K)x(K,N) contraction with Out on lanes and no per-tile transpose.
    """
    return jnp.asarray(weight).T


def _select_tiles(B, In, Out, itemsize, use_scratch, vmem_budget):
    tm = B if B <= _TM_CAP else _TM_CAP
    tn = Out if Out <= _TN_CAP else _TN_CAP
    if In <= 128:
        tk = In
    else:
        tk = min(_TK_CAP, (In // 128) * 128)

    def footprint(tm_, tn_, tk_):
        dbl = 2 * (tm_ * tk_ + tk_ * tn_ + tm_ * tn_ + tn_) * itemsize
        acc = tm_ * tn_ * 4 if use_scratch else 0
        return dbl + acc

    # Generation-aware shrink: keep the double-buffered working set in budget
    # (64 MiB VMEM on v7x vs 128 MiB on v5e/v6e).
    while footprint(tm, tn, tk) > vmem_budget:
        if tk >= 256:
            tk = max(128, (tk // 2 // 128) * 128)
        elif tm >= 16:
            tm = _round_up(tm // 2, 8)
        elif tn >= 256:
            tn //= 2
        else:
            break

    # Ensure the "parallel" (i, j) grid has >= 2 blocks when the batch is
    # splittable, so both v7x TensorCores get work.
    if pl.cdiv(B, tm) * pl.cdiv(Out, tn) < 2 and B > 8:
        tm = max(8, _round_up(pl.cdiv(B, 2), 8))

    return tm, tn, tk


def logistic_regression_forward(x, weight_t, bias):
    """LogisticRegression forward (a plain nn.Linear): y = x @ W^T + b.

    x:        (B, In)
    weight_t: (In, Out)  -- nn.Linear weight pre-transposed once via prepare_weight
    bias:     (Out,)
    """
    B, In = x.shape
    In_w, Out = weight_t.shape
    assert In == In_w
    assert bias.shape == (Out,)

    out_dtype = x.dtype
    use_scratch = out_dtype != jnp.float32
    itemsize = jnp.dtype(x.dtype).itemsize

    try:
        vmem_cap = pltpu.get_tpu_info().vmem_capacity_bytes
    except Exception:
        vmem_cap = 64 * 1024 * 1024          # conservative (v7x per-TC VMEM)
    vmem_budget = int(vmem_cap * 0.75)       # leave headroom for compiler scratch

    tm, tn, tk = _select_tiles(B, In, Out, itemsize, use_scratch, vmem_budget)
    mask_k = (In % tk) != 0

    grid = (pl.cdiv(B, tm), pl.cdiv(Out, tn), pl.cdiv(In, tk))

    bias2d = bias.reshape(1, Out)

    kernel = functools.partial(
        _linear_kernel, in_features=In, tk=tk, mask_k=mask_k)

    cost = pl.CostEstimate(
        flops=2 * B * In * Out,
        transcendentals=0,
        bytes_accessed=(x.size * itemsize
                        + weight_t.size * jnp.dtype(weight_t.dtype).itemsize
                        + bias.size * jnp.dtype(bias.dtype).itemsize
                        + B * Out * jnp.dtype(out_dtype).itemsize),
    )

    scratch_shapes = [pltpu.VMEM((tm, tn), jnp.float32)] if use_scratch else []

    return pl.pallas_call(
        kernel,
        out_shape=jax.ShapeDtypeStruct((B, Out), out_dtype),
        grid_spec=pltpu.PrefetchScalarGridSpec(
            num_scalar_prefetch=0,
            grid=grid,
            in_specs=[
                pl.BlockSpec((tm, tk), lambda i, j, k: (i, k)),   # x
                pl.BlockSpec((tk, tn), lambda i, j, k: (k, j)),   # weight (In, Out)
                pl.BlockSpec((1, tn), lambda i, j, k: (0, j)),    # bias
            ],
            out_specs=pl.BlockSpec((tm, tn), lambda i, j, k: (i, j)),
            scratch_shapes=scratch_shapes,
        ),
        compiler_params=pltpu.CompilerParams(
            dimension_semantics=("parallel", "parallel", "arbitrary"),
            vmem_limit_bytes=vmem_budget,
        ),
        cost_estimate=cost,
    )(x, weight_t, bias2d)


def _reference(x, weight, bias):
    return x @ weight.T + bias[None, :]


if __name__ == "__main__":
    key = jax.random.PRNGKey(0)
    kx, kw, kb, kx2, kw2, kb2 = jax.random.split(key, 6)

    # --- Small shape consistent with nn.Linear(in_features, out_features) ----
    batch, in_features, out_features = 8, 32, 16
    x = jax.random.normal(kx, (batch, in_features), dtype=jnp.float32)
    bound = 1.0 / jnp.sqrt(jnp.float32(in_features))
    weight = jax.random.uniform(kw, (out_features, in_features),
                                minval=-bound, maxval=bound, dtype=jnp.float32)
    bias = jax.random.uniform(kb, (out_features,),
                              minval=-bound, maxval=bound, dtype=jnp.float32)

    weight_t = prepare_weight(weight)     # one-time parameter-layout setup
    fwd = jax.jit(logistic_regression_forward)

    out = jax.block_until_ready(fwd(x, weight_t, bias))
    ref = _reference(x, weight, bias)
    assert out.shape == (batch, out_features)
    assert jnp.allclose(out, ref, atol=1e-5, rtol=1e-5)

    # --- Non-(8,128)-aligned shape: exercises edge blocks + in-kernel K mask --
    b2, i2, o2 = 12, 200, 24
    x2 = jax.random.normal(kx2, (b2, i2), dtype=jnp.float32)
    bound2 = 1.0 / jnp.sqrt(jnp.float32(i2))
    w2 = jax.random.uniform(kw2, (o2, i2), minval=-bound2, maxval=bound2,
                            dtype=jnp.float32)
    bz2 = jax.random.uniform(kb2, (o2,), minval=-bound2, maxval=bound2,
                             dtype=jnp.float32)
    out2 = jax.block_until_ready(fwd(x2, prepare_weight(w2), bz2))
    assert out2.shape == (b2, o2)
    assert jnp.allclose(out2, _reference(x2, w2, bz2), atol=1e-4, rtol=1e-4)

    print("KERNEL_OK")
</pallas_src>

<mosaic_0001>
module attributes {stable_mosaic.version = 11 : i64} {
  func.func @_linear_kernel(%arg0: i32, %arg1: i32, %arg2: i32, %arg3: memref<8x32xf32, #tpu.memory_space<vmem>>, %arg4: memref<32x16xf32, #tpu.memory_space<vmem>>, %arg5: memref<1x16xf32, #tpu.memory_space<vmem>>, %arg6: memref<8x16xf32, #tpu.memory_space<vmem>>) attributes {dimension_semantics = [#tpu.dimension_semantics<parallel>, #tpu.dimension_semantics<parallel>, #tpu.dimension_semantics<arbitrary>], iteration_bounds = array<i64: 1, 1, 1>, scalar_prefetch = 0 : i64, scratch_operands = 0 : i64, tpu.core_type = #tpu.core_type<tc>, window_params = [{transform_indices = @transform_0, window_bounds = array<i64: 8, 32>}, {transform_indices = @transform_1, window_bounds = array<i64: 32, 16>}, {transform_indices = @transform_2, window_bounds = array<i64: 1, 16>}, {transform_indices = @transform_3, window_bounds = array<i64: 8, 16>}]} {
    %c0_i32 = arith.constant 0 : i32
    %0 = arith.cmpi eq, %arg2, %c0_i32 : i32
    %1 = arith.extui %0 : i1 to i32
    %c0_i32_0 = arith.constant 0 : i32
    %2 = arith.cmpi ne, %1, %c0_i32_0 : i32
    scf.if %2 {
      %c0_8 = arith.constant 0 : index
      %c0_9 = arith.constant 0 : index
      %9 = vector.load %arg5[%c0_8, %c0_9] : memref<1x16xf32, #tpu.memory_space<vmem>>, vector<1x16xf32>
      %10 = vector.shape_cast %9 : vector<1x16xf32> to vector<1x16xf32>
      %11 = vector.broadcast %10 : vector<1x16xf32> to vector<8x16xf32>
      %c0_10 = arith.constant 0 : index
      %c0_11 = arith.constant 0 : index
      %12 = vector.load %arg6[%c0_10, %c0_11] : memref<8x16xf32, #tpu.memory_space<vmem>>, vector<8x16xf32>
      tpu.vector_store %arg6[%c0_10, %c0_11], %11 {strides = array<i32>} : memref<8x16xf32, #tpu.memory_space<vmem>>, vector<8x16xf32>,
    } else {
    }
    %c0 = arith.constant 0 : index
    %c0_1 = arith.constant 0 : index
    %3 = vector.load %arg3[%c0, %c0_1] : memref<8x32xf32, #tpu.memory_space<vmem>>, vector<8x32xf32>
    %c0_2 = arith.constant 0 : index
    %c0_3 = arith.constant 0 : index
    %4 = vector.load %arg4[%c0_2, %c0_3] : memref<32x16xf32, #tpu.memory_space<vmem>>, vector<32x16xf32>
    %c0_4 = arith.constant 0 : index
    %c0_5 = arith.constant 0 : index
    %5 = vector.load %arg6[%c0_4, %c0_5] : memref<8x16xf32, #tpu.memory_space<vmem>>, vector<8x16xf32>
    %cst = arith.constant dense<0.000000e+00> : vector<8x16xf32>
    %6 = tpu.matmul %3, %4, %cst {dimension_numbers = #tpu.dot_dimension_numbers<[1], [0], [0], [1], [0, 0, 1, 1], [], []>} : vector<8x32xf32>, vector<32x16xf32>, vector<8x16xf32> -> vector<8x16xf32>
    %7 = arith.addf %5, %6 : vector<8x16xf32>
    %c0_6 = arith.constant 0 : index
    %c0_7 = arith.constant 0 : index
    %8 = vector.load %arg6[%c0_6, %c0_7] : memref<8x16xf32, #tpu.memory_space<vmem>>, vector<8x16xf32>
    tpu.vector_store %arg6[%c0_6, %c0_7], %7 {strides = array<i32>} : memref<8x16xf32, #tpu.memory_space<vmem>>, vector<8x16xf32>,
    return
  }
  func.func @transform_0(%arg0: i32, %arg1: i32, %arg2: i32) -> (i32, i32) {
    %c0_i32 = arith.constant 0 : i32
    return %arg0, %arg2 : i32, i32
  }
  func.func @transform_1(%arg0: i32, %arg1: i32, %arg2: i32) -> (i32, i32) {
    %c0_i32 = arith.constant 0 : i32
    return %arg2, %arg1 : i32, i32
  }
  func.func @transform_2(%arg0: i32, %arg1: i32, %arg2: i32) -> (i32, i32) {
    %c0_i32 = arith.constant 0 : i32
    %c0_i32_0 = arith.constant 0 : i32
    return %c0_i32, %arg1 : i32, i32
  }
  func.func @transform_3(%arg0: i32, %arg1: i32, %arg2: i32) -> (i32, i32) {
    %c0_i32 = arith.constant 0 : i32
    return %arg0, %arg1 : i32, i32
  }
}

</mosaic_0001>

<bundles_post_ra>
// kernel: logistic_regression_forward.1
= control target key start
LH: loop header
LB: loop body
LE: loop exit
PB: predicated region body
PF: predicated region fallthrough
CT: control target
= control target key end

     0   :  { %vm23_vm0 = vcmask 130048   ;;  %s147_s0 = inlined_call_operand.vmem [shape: f32[8,32], index: 0, kind: input, shape index: {}]   ;;  %s148_s1 = inlined_call_operand.vmem [shape: f32[32,16], index: 1, kind: input, shape index: {}]   ;;  %s149_s2 = inlined_call_operand.vmem [shape: f32[1,16], index: 2, kind: input, shape index: {}]   ;;  %s150_s3 = inlined_call_operand.hbm [shape: f32[8,16], index: 3, kind: output, shape index: {}]  }
   0x1   :  { %v29_v0 = vld [vmem:[%s148_s1 + $0x18] sm:$0xff]  ;;  %v28_v1 = vld [vmem:[%s148_s1 + $0x10] sm:$0xff]  ;;  %v27_v2 = vld [vmem:[%s148_s1 + $0x8] sm:$0xff] }
   0x2   :  { %47 = vmatpush.msra.mxu0 %v29_v0  ;;  %v76_v3 = vld [vmem:[%s149_s2] ss:$0 sm:$0xff] }
   0x3   :  { %8 = vsyncpa [#allocation3], 0  ;;  %v26_v4 = vld [vmem:[%s148_s1] sm:$0xff]  ;;  %24 = vst.msk [vmem:[#allocation2] sm:$0xff] %vm23_vm0, %v76_v3  ;;  %vm31_vm1 = vcmask 261120   ;;  %s103_s24 = smov [#allocation2]  }
   0x4   :  { %48 = vmatpush.msra.mxu0 %v28_v1  ;;  %v25_v5 = vld [vmem:[%s147_s0] sm:$0xff]  ;;  %s63_s25 = sshll.u32 %s103_s24, 4  ;;  %s65_s27 = sshll.u32 %s150_s3, 4  ;;  %s64_s25 = int_to_ptr.vmem [resolvable:$true] %s63_s25  ;;  %s66_s27 = int_to_ptr.hbm [resolvable:$true] %s65_s27 }
   0x6   :  { %49 = vmatpush.msra.mxu0 %v27_v2 }
   0x8   :  { %50 = vmatpush.msra.mxu0 %v26_v4 }
   0x9   :  { %74 = vmatmul.msk.f32.vlgmr.msra.gmra.mxu0 %vm31_vm1, %v25_v5 }
   0xa   :  { %v30_v6 = vld [vmem:[#allocation2] sm:$0xff] }
  0x86   :  { %v52_v7 = vpop.f32.mrf.mxu0 }
  0x87   :  { %v55_v8 = vadd.f32 %v52_v7, %v30_v6 }
  0x89   :  { %57 = vst.msk [vmem:[#allocation2] sm:$0xff] %vm23_vm0, %v55_v8 }
  0x8a   :  { %68 = dma.vmem_to_hbm [thread:$0]  %s64_s25, 128, %s66_s27, [#allocation3]  }
  0x8b   :  { %101 = dma.done.wait [#allocation3], 128  }
  0x8c   :  { %102 = vsyncadd [#allocation3], 4294967168 }
  0x8d   :  { %73 = vsyncpa [#allocation3], 1 }

</bundles_post_ra>
